<compile_context>
chip_gen: v6e
topology: v6e:2x2x1
jax: 0.10.0
libtpu: 0.0.40
codegen_flags: <defaults>
</compile_context>

<pallas_src>
import functools

import jax
import jax.numpy as jnp
from jax.experimental import pallas as pl
from jax.experimental.pallas import tpu as pltpu


# ---- static architecture constants -----------------------------------------
# Linear(192,...) after Conv2d(1,32,4) + Conv2d(32,32,2) implies a 6x7 input
# board: 32 * (6-4) * (7-4) = 192.
H, W = 6, 7
C1, K1 = 32, 4                              # conv1: 1 -> 32 channels, 4x4
C2, K2 = 32, 2                              # conv2: 32 -> 32 channels, 2x2
OH1, OW1 = H - K1 + 1, W - K1 + 1           # 3, 4
OH2, OW2 = OH1 - K2 + 1, OW1 - K2 + 1       # 2, 3
N_PIX = H * W                               # 42  raw pixels
N_C1 = OH1 * OW1 * C1                       # 384 conv1 features (NHWC order)
N_C2 = C2 * OH2 * OW2                       # 192 conv2 features (NCHW flatten)

# padded, lane-aligned layer widths used by the packed weights
D_IN, D1, D2, D3, D4, D_OUT = 128, 512, 256, 128, 128, 128


# ---- kernel -----------------------------------------------------------------
def fused_forward_kernel(x_ref, w1_ref, w2_ref, w3_ref, w4_ref, w5_ref,
                         b4_ref, b5_ref, o_ref, xbuf_ref):
    """Whole network as 5 chained bf16 MXU matmuls with f32 accumulation.

    conv1/conv2/lin1 biases ride in a carrier lane (value 1.0, survives every
    ReLU); lin2/lin3 biases are added on the VPU (which has slack).
    """
    bb = xbuf_ref.shape[0]

    # Build the lane-padded input tile in VMEM: pixels in lanes 0..41,
    # bias-carrier 1.0 in lane 42, zeros elsewhere.
    lane = jax.lax.broadcasted_iota(jnp.int32, (bb, D_IN), 1)
    xbuf_ref[...] = jnp.where(lane == N_PIX,
                              jnp.float32(1.0), jnp.float32(0.0))
    xbuf_ref[:, :N_PIX] = x_ref[...]

    def mm(a, w_ref):  # bf16 operands, f32 accumulation
        return jnp.dot(a.astype(jnp.bfloat16), w_ref[...],
                       preferred_element_type=jnp.float32)

    h = jnp.maximum(mm(xbuf_ref[...], w1_ref), 0.0)      # conv1+b, ReLU (bb,512)
    h = jnp.maximum(mm(h, w2_ref), 0.0)                  # conv2+b, ReLU (bb,256)
    h = jnp.maximum(mm(h, w3_ref), 0.0)                  # lin1+b,  ReLU (bb,128)
    h = jnp.maximum(mm(h, w4_ref) + b4_ref[...], 0.0)    # lin2+b,  ReLU (bb,128)
    o_ref[...] = mm(h, w5_ref) + b5_ref[...]             # lin3+b        (bb,128)


# ---- parameters (natural PyTorch-style layout) ------------------------------
def init_params(key, n_actions=7):
    """kaiming_uniform_ weights like the module's __init__ (biases are zeroed
    there; see __main__ where they are perturbed to exercise the bias path)."""
    ks = jax.random.split(key, 5)

    def kaiming_uniform(k, shape, fan_in):
        bound = float(jnp.sqrt(6.0 / fan_in))
        return jax.random.uniform(k, shape, jnp.float32, -bound, bound)

    return {
        "conv1_w": kaiming_uniform(ks[0], (C1, 1, K1, K1), 1 * K1 * K1),    # OIHW
        "conv1_b": jnp.zeros((C1,), jnp.float32),
        "conv2_w": kaiming_uniform(ks[1], (C2, C1, K2, K2), C1 * K2 * K2),  # OIHW
        "conv2_b": jnp.zeros((C2,), jnp.float32),
        # Linear weights stored (in, out); real torch weights are (out, in) and
        # must be transposed before packing when loading a trained state_dict.
        "lin1_w": kaiming_uniform(ks[2], (N_C2, 128), N_C2),
        "lin1_b": jnp.zeros((128,), jnp.float32),
        "lin2_w": kaiming_uniform(ks[3], (128, 64), 128),
        "lin2_b": jnp.zeros((64,), jnp.float32),
        "lin3_w": kaiming_uniform(ks[4], (64, n_actions), 64),
        "lin3_b": jnp.zeros((n_actions,), jnp.float32),
    }


def _conv_toeplitz(w_oihw, in_shape_hwc, out_layout):
    """Toeplitz (im2col-expanded) matrix for a VALID conv, built once at init.

    Rows enumerate the input feature map in NHWC flatten order; columns
    enumerate the conv output in `out_layout` flatten order.  Satisfies
    flat_in @ T == flatten(conv(in)) (no bias).
    """
    h, w, c = in_shape_hwc
    n_in = h * w * c
    basis = jnp.eye(n_in, dtype=jnp.float32).reshape(n_in, h, w, c)
    basis = jnp.transpose(basis, (0, 3, 1, 2))                       # NCHW
    out = jax.lax.conv_general_dilated(
        basis, w_oihw, window_strides=(1, 1), padding="VALID",
        dimension_numbers=("NCHW", "OIHW", "NCHW"))                  # (n_in,OC,OH,OW)
    if out_layout == "NHWC":
        out = jnp.transpose(out, (0, 2, 3, 1))
    return out.reshape(n_in, -1)


def pack_params(p, n_actions=7):
    """Build the packed, bias-folded operands consumed by the kernel:
    5 bf16 weight matrices + 2 f32 bias rows."""
    f32 = jnp.float32

    # Layer 1: pixels (lanes 0..41, carrier lane 42) -> conv1 NHWC (384) + carrier.
    t1 = _conv_toeplitz(p["conv1_w"], (H, W, 1), "NHWC")             # (42, 384)
    w1 = jnp.zeros((D_IN, D1), f32)
    w1 = w1.at[:N_PIX, :N_C1].set(t1)
    w1 = w1.at[N_PIX, :N_C1].set(jnp.tile(p["conv1_b"], OH1 * OW1))  # NHWC bias
    w1 = w1.at[N_PIX, N_C1].set(1.0)                                 # h1[:,384] = 1

    # Layer 2: conv2 on NHWC-flat h1; columns in torch NCHW-flatten order.
    t2 = _conv_toeplitz(p["conv2_w"], (OH1, OW1, C1), "NCHW")        # (384, 192)
    w2 = jnp.zeros((D1, D2), f32)
    w2 = w2.at[:N_C1, :N_C2].set(t2)
    w2 = w2.at[N_C1, :N_C2].set(jnp.repeat(p["conv2_b"], OH2 * OW2))  # NCHW bias
    w2 = w2.at[N_C1, N_C2].set(1.0)                                  # h2[:,192] = 1

    # Linear(192,128): bias folded via h2's carrier lane; no output carrier.
    w3 = jnp.zeros((D2, D3), f32)
    w3 = w3.at[:N_C2, :128].set(p["lin1_w"])
    w3 = w3.at[N_C2, :128].set(p["lin1_b"])

    # Linear(128,64) / Linear(64,n_actions): biases added in-kernel on the VPU.
    w4 = jnp.zeros((D3, D4), f32).at[:, :64].set(p["lin2_w"])
    w5 = jnp.zeros((D4, D_OUT), f32).at[:64, :n_actions].set(p["lin3_w"])
    b4 = jnp.zeros((1, D_OUT), f32).at[0, :64].set(p["lin2_b"])
    b5 = jnp.zeros((1, D_OUT), f32).at[0, :n_actions].set(p["lin3_b"])

    bf16 = jnp.bfloat16
    return (w1.astype(bf16), w2.astype(bf16), w3.astype(bf16),
            w4.astype(bf16), w5.astype(bf16), b4, b5)


# ---- forward pass ------------------------------------------------------------
def _round_up(x, m):
    return ((x + m - 1) // m) * m


@functools.partial(jax.jit, static_argnames=("n_actions", "block_b"))
def cnn_forward(x, packed, n_actions=7, block_b=256):
    """x: (B, 1, 6, 7) float32 (NCHW).  Returns (B, n_actions) action values."""
    B = x.shape[0]
    xflat = x.astype(jnp.float32).reshape(B, N_PIX)

    # Pad batch to a multiple of 8 (unmasked sublane stores), tile it on a
    # 1-D grid so weights stay VMEM-resident and v7x's 2 TCs can split it.
    bb = _round_up(min(block_b, _round_up(B, 8)), 8)
    Bp = _round_up(B, bb)
    if Bp != B:
        xflat = jnp.pad(xflat, ((0, Bp - B), (0, 0)))
    nb = Bp // bb

    layer_kn = ((D_IN, D1), (D1, D2), (D2, D3), (D3, D4), (D4, D_OUT))
    flops = 2 * Bp * sum(k * n for k, n in layer_kn)
    bytes_accessed = (sum(k * n for k, n in layer_kn) * 2       # bf16 weights
                      + 2 * D_OUT * 4                           # f32 bias rows
                      + Bp * (N_PIX * 4 + D_OUT * 4))           # x in / q out

    grid_spec = pltpu.PrefetchScalarGridSpec(
        num_scalar_prefetch=0,
        grid=(nb,),
        in_specs=[
            pl.BlockSpec((bb, N_PIX), lambda i: (i, 0)),        # raw pixel rows
            # Weights/biases: constant index_map -> fetched once, VMEM-resident.
            pl.BlockSpec((D_IN, D1), lambda i: (0, 0)),
            pl.BlockSpec((D1, D2), lambda i: (0, 0)),
            pl.BlockSpec((D2, D3), lambda i: (0, 0)),
            pl.BlockSpec((D3, D4), lambda i: (0, 0)),
            pl.BlockSpec((D4, D_OUT), lambda i: (0, 0)),
            pl.BlockSpec((1, D_OUT), lambda i: (0, 0)),
            pl.BlockSpec((1, D_OUT), lambda i: (0, 0)),
        ],
        out_specs=pl.BlockSpec((bb, D_OUT), lambda i: (i, 0)),
        scratch_shapes=[pltpu.VMEM((bb, D_IN), jnp.float32)],   # padded input tile
    )

    out = pl.pallas_call(
        fused_forward_kernel,
        out_shape=jax.ShapeDtypeStruct((Bp, D_OUT), jnp.float32),
        grid_spec=grid_spec,
        compiler_params=pltpu.CompilerParams(
            dimension_semantics=("parallel",)),
        cost_estimate=pl.CostEstimate(flops=flops, transcendentals=0,
                                      bytes_accessed=bytes_accessed),
    )(xflat, *packed)
    # TODO(synk): at B<=8 per-step latency, weight DMA could additionally be
    # overlapped with the first dot via memory_space=pl.ANY + manual copies.
    return out[:B, :n_actions]                # drop row + lane padding


# ---- pure-JAX f32 reference (mirrors the PyTorch module) ---------------------
def reference_forward(x, p):
    dn = ("NCHW", "OIHW", "NCHW")
    h = jax.lax.conv_general_dilated(x, p["conv1_w"], (1, 1), "VALID",
                                     dimension_numbers=dn)
    h = jnp.maximum(h + p["conv1_b"][None, :, None, None], 0.0)
    h = jax.lax.conv_general_dilated(h, p["conv2_w"], (1, 1), "VALID",
                                     dimension_numbers=dn)
    h = h + p["conv2_b"][None, :, None, None]
    h = jnp.maximum(h.reshape(x.shape[0], -1), 0.0)          # Flatten -> ReLU
    h = jnp.maximum(h @ p["lin1_w"] + p["lin1_b"], 0.0)
    h = jnp.maximum(h @ p["lin2_w"] + p["lin2_b"], 0.0)
    return h @ p["lin3_w"] + p["lin3_b"]


if __name__ == "__main__":
    n_actions = 7
    key = jax.random.PRNGKey(0)
    k_params, k_bias, k_x = jax.random.split(key, 3)
    params = init_params(k_params, n_actions)

    # PyTorch's __init__ zeroes the biases; perturb them here so the
    # folded-bias (carrier-lane / VPU-add) paths are actually exercised.
    for name, kb in zip(("conv1_b", "conv2_b", "lin1_b", "lin2_b", "lin3_b"),
                        jax.random.split(k_bias, 5)):
        params[name] = 0.1 * jax.random.normal(kb, params[name].shape,
                                               dtype=jnp.float32)

    packed = pack_params(params, n_actions)

    B = 4
    x = jax.random.normal(k_x, (B, 1, H, W), dtype=jnp.float32)

    q = cnn_forward(x, packed, n_actions=n_actions)
    q = jax.block_until_ready(q)

    q_ref = reference_forward(x, params)

    assert q.shape == (B, n_actions)
    assert bool(jnp.all(jnp.isfinite(q)))
    # bf16 weights / dot operands with f32 accumulation -> relaxed tolerance.
    assert bool(jnp.allclose(q, q_ref, atol=5e-2, rtol=5e-2))

    print("KERNEL_OK")
</pallas_src>

<mosaic_0001>
module attributes {stable_mosaic.version = 11 : i64} {
  func.func @fused_forward_kernel(%arg0: i32, %arg1: memref<8x42xf32, #tpu.memory_space<vmem>>, %arg2: memref<128x512xbf16, #tpu.memory_space<vmem>>, %arg3: memref<512x256xbf16, #tpu.memory_space<vmem>>, %arg4: memref<256x128xbf16, #tpu.memory_space<vmem>>, %arg5: memref<128x128xbf16, #tpu.memory_space<vmem>>, %arg6: memref<128x128xbf16, #tpu.memory_space<vmem>>, %arg7: memref<1x128xf32, #tpu.memory_space<vmem>>, %arg8: memref<1x128xf32, #tpu.memory_space<vmem>>, %arg9: memref<8x128xf32, #tpu.memory_space<vmem>>, %arg10: memref<8x128xf32, #tpu.memory_space<vmem>>) attributes {dimension_semantics = [#tpu.dimension_semantics<parallel>], iteration_bounds = array<i64: 1>, scalar_prefetch = 0 : i64, scratch_operands = 1 : i64, tpu.core_type = #tpu.core_type<tc>, window_params = [{transform_indices = @transform_0, window_bounds = array<i64: 8, 42>}, {pipeline_mode = #tpu.pipeline_mode<synchronous>, transform_indices = @transform_1, window_bounds = array<i64: 128, 512>}, {pipeline_mode = #tpu.pipeline_mode<synchronous>, transform_indices = @transform_2, window_bounds = array<i64: 512, 256>}, {pipeline_mode = #tpu.pipeline_mode<synchronous>, transform_indices = @transform_3, window_bounds = array<i64: 256, 128>}, {pipeline_mode = #tpu.pipeline_mode<synchronous>, transform_indices = @transform_4, window_bounds = array<i64: 128, 128>}, {pipeline_mode = #tpu.pipeline_mode<synchronous>, transform_indices = @transform_5, window_bounds = array<i64: 128, 128>}, {pipeline_mode = #tpu.pipeline_mode<synchronous>, transform_indices = @transform_6, window_bounds = array<i64: 1, 128>}, {pipeline_mode = #tpu.pipeline_mode<synchronous>, transform_indices = @transform_7, window_bounds = array<i64: 1, 128>}, {transform_indices = @transform_8, window_bounds = array<i64: 8, 128>}]} {
    %0 = tpu.iota {dimensions = array<i32: 1>} : vector<8x128xi32>
    %c42_i32 = arith.constant 42 : i32
    %1 = vector.broadcast %c42_i32 : i32 to vector<8x128xi32>
    %2 = arith.cmpi eq, %0, %1 : vector<8x128xi32>
    %cst = arith.constant 1.000000e+00 : f32
    %cst_0 = arith.constant 0.000000e+00 : f32
    %3 = vector.broadcast %cst : f32 to vector<8x128xf32>
    %4 = vector.broadcast %cst_0 : f32 to vector<8x128xf32>
    %5 = arith.select %2, %3, %4 : vector<8x128xi1>, vector<8x128xf32>
    %c0 = arith.constant 0 : index
    %c0_1 = arith.constant 0 : index
    %6 = vector.load %arg10[%c0, %c0_1] : memref<8x128xf32, #tpu.memory_space<vmem>>, vector<8x128xf32>
    tpu.vector_store %arg10[%c0, %c0_1], %5 {strides = array<i32>} : memref<8x128xf32, #tpu.memory_space<vmem>>, vector<8x128xf32>,
    %c0_2 = arith.constant 0 : index
    %c0_3 = arith.constant 0 : index
    %7 = vector.load %arg1[%c0_2, %c0_3] : memref<8x42xf32, #tpu.memory_space<vmem>>, vector<8x42xf32>
    %c0_4 = arith.constant 0 : index
    %c0_5 = arith.constant 0 : index
    %8 = vector.load %arg10[%c0_4, %c0_5] : memref<8x128xf32, #tpu.memory_space<vmem>>, vector<8x42xf32>
    tpu.vector_store %arg10[%c0_4, %c0_5], %7 {strides = array<i32>} : memref<8x128xf32, #tpu.memory_space<vmem>>, vector<8x42xf32>,
    %c0_6 = arith.constant 0 : index
    %c0_7 = arith.constant 0 : index
    %9 = vector.load %arg10[%c0_6, %c0_7] : memref<8x128xf32, #tpu.memory_space<vmem>>, vector<8x128xf32>
    %10 = arith.truncf %9 : vector<8x128xf32> to vector<8x128xbf16>
    %c0_8 = arith.constant 0 : index
    %c0_9 = arith.constant 0 : index
    %11 = vector.load %arg2[%c0_8, %c0_9] : memref<128x512xbf16, #tpu.memory_space<vmem>>, vector<128x512xbf16>
    %cst_10 = arith.constant dense<0.000000e+00> : vector<8x512xf32>
    %12 = tpu.matmul %10, %11, %cst_10 {dimension_numbers = #tpu.dot_dimension_numbers<[1], [0], [0], [1], [0, 0, 1, 1], [], []>} : vector<8x128xbf16>, vector<128x512xbf16>, vector<8x512xf32> -> vector<8x512xf32>
    %cst_11 = arith.constant 0.000000e+00 : f32
    %13 = vector.broadcast %cst_11 : f32 to vector<8x512xf32>
    %14 = arith.maximumf %12, %13 : vector<8x512xf32>
    %15 = arith.truncf %14 : vector<8x512xf32> to vector<8x512xbf16>
    %c0_12 = arith.constant 0 : index
    %c0_13 = arith.constant 0 : index
    %16 = vector.load %arg3[%c0_12, %c0_13] : memref<512x256xbf16, #tpu.memory_space<vmem>>, vector<512x256xbf16>
    %cst_14 = arith.constant dense<0.000000e+00> : vector<8x256xf32>
    %17 = tpu.matmul %15, %16, %cst_14 {dimension_numbers = #tpu.dot_dimension_numbers<[1], [0], [0], [1], [0, 0, 1, 1], [], []>} : vector<8x512xbf16>, vector<512x256xbf16>, vector<8x256xf32> -> vector<8x256xf32>
    %cst_15 = arith.constant 0.000000e+00 : f32
    %18 = vector.broadcast %cst_15 : f32 to vector<8x256xf32>
    %19 = arith.maximumf %17, %18 : vector<8x256xf32>
    %20 = arith.truncf %19 : vector<8x256xf32> to vector<8x256xbf16>
    %c0_16 = arith.constant 0 : index
    %c0_17 = arith.constant 0 : index
    %21 = vector.load %arg4[%c0_16, %c0_17] : memref<256x128xbf16, #tpu.memory_space<vmem>>, vector<256x128xbf16>
    %cst_18 = arith.constant dense<0.000000e+00> : vector<8x128xf32>
    %22 = tpu.matmul %20, %21, %cst_18 {dimension_numbers = #tpu.dot_dimension_numbers<[1], [0], [0], [1], [0, 0, 1, 1], [], []>} : vector<8x256xbf16>, vector<256x128xbf16>, vector<8x128xf32> -> vector<8x128xf32>
    %cst_19 = arith.constant 0.000000e+00 : f32
    %23 = vector.broadcast %cst_19 : f32 to vector<8x128xf32>
    %24 = arith.maximumf %22, %23 : vector<8x128xf32>
    %25 = arith.truncf %24 : vector<8x128xf32> to vector<8x128xbf16>
    %c0_20 = arith.constant 0 : index
    %c0_21 = arith.constant 0 : index
    %26 = vector.load %arg5[%c0_20, %c0_21] : memref<128x128xbf16, #tpu.memory_space<vmem>>, vector<128x128xbf16>
    %cst_22 = arith.constant dense<0.000000e+00> : vector<8x128xf32>
    %27 = tpu.matmul %25, %26, %cst_22 {dimension_numbers = #tpu.dot_dimension_numbers<[1], [0], [0], [1], [0, 0, 1, 1], [], []>} : vector<8x128xbf16>, vector<128x128xbf16>, vector<8x128xf32> -> vector<8x128xf32>
    %c0_23 = arith.constant 0 : index
    %c0_24 = arith.constant 0 : index
    %28 = vector.load %arg7[%c0_23, %c0_24] : memref<1x128xf32, #tpu.memory_space<vmem>>, vector<1x128xf32>
    %29 = vector.broadcast %28 : vector<1x128xf32> to vector<8x128xf32>
    %30 = arith.addf %27, %29 : vector<8x128xf32>
    %cst_25 = arith.constant 0.000000e+00 : f32
    %31 = vector.broadcast %cst_25 : f32 to vector<8x128xf32>
    %32 = arith.maximumf %30, %31 : vector<8x128xf32>
    %33 = arith.truncf %32 : vector<8x128xf32> to vector<8x128xbf16>
    %c0_26 = arith.constant 0 : index
    %c0_27 = arith.constant 0 : index
    %34 = vector.load %arg6[%c0_26, %c0_27] : memref<128x128xbf16, #tpu.memory_space<vmem>>, vector<128x128xbf16>
    %cst_28 = arith.constant dense<0.000000e+00> : vector<8x128xf32>
    %35 = tpu.matmul %33, %34, %cst_28 {dimension_numbers = #tpu.dot_dimension_numbers<[1], [0], [0], [1], [0, 0, 1, 1], [], []>} : vector<8x128xbf16>, vector<128x128xbf16>, vector<8x128xf32> -> vector<8x128xf32>
    %c0_29 = arith.constant 0 : index
    %c0_30 = arith.constant 0 : index
    %36 = vector.load %arg8[%c0_29, %c0_30] : memref<1x128xf32, #tpu.memory_space<vmem>>, vector<1x128xf32>
    %37 = vector.broadcast %36 : vector<1x128xf32> to vector<8x128xf32>
    %38 = arith.addf %35, %37 : vector<8x128xf32>
    %c0_31 = arith.constant 0 : index
    %c0_32 = arith.constant 0 : index
    %39 = vector.load %arg9[%c0_31, %c0_32] : memref<8x128xf32, #tpu.memory_space<vmem>>, vector<8x128xf32>
    tpu.vector_store %arg9[%c0_31, %c0_32], %38 {strides = array<i32>} : memref<8x128xf32, #tpu.memory_space<vmem>>, vector<8x128xf32>,
    return
  }
  func.func @transform_0(%arg0: i32) -> (i32, i32) {
    %c0_i32 = arith.constant 0 : i32
    %c0_i32_0 = arith.constant 0 : i32
    return %arg0, %c0_i32 : i32, i32
  }
  func.func @transform_1(%arg0: i32) -> (i32, i32) {
    %c0_i32 = arith.constant 0 : i32
    %c0_i32_0 = arith.constant 0 : i32
    %c0_i32_1 = arith.constant 0 : i32
    return %c0_i32, %c0_i32_0 : i32, i32
  }
  func.func @transform_2(%arg0: i32) -> (i32, i32) {
    %c0_i32 = arith.constant 0 : i32
    %c0_i32_0 = arith.constant 0 : i32
    %c0_i32_1 = arith.constant 0 : i32
    return %c0_i32, %c0_i32_0 : i32, i32
  }
  func.func @transform_3(%arg0: i32) -> (i32, i32) {
    %c0_i32 = arith.constant 0 : i32
    %c0_i32_0 = arith.constant 0 : i32
    %c0_i32_1 = arith.constant 0 : i32
    return %c0_i32, %c0_i32_0 : i32, i32
  }
  func.func @transform_4(%arg0: i32) -> (i32, i32) {
    %c0_i32 = arith.constant 0 : i32
    %c0_i32_0 = arith.constant 0 : i32
    %c0_i32_1 = arith.constant 0 : i32
    return %c0_i32, %c0_i32_0 : i32, i32
  }
  func.func @transform_5(%arg0: i32) -> (i32, i32) {
    %c0_i32 = arith.constant 0 : i32
    %c0_i32_0 = arith.constant 0 : i32
    %c0_i32_1 = arith.constant 0 : i32
    return %c0_i32, %c0_i32_0 : i32, i32
  }
  func.func @transform_6(%arg0: i32) -> (i32, i32) {
    %c0_i32 = arith.constant 0 : i32
    %c0_i32_0 = arith.constant 0 : i32
    %c0_i32_1 = arith.constant 0 : i32
    return %c0_i32, %c0_i32_0 : i32, i32
  }
  func.func @transform_7(%arg0: i32) -> (i32, i32) {
    %c0_i32 = arith.constant 0 : i32
    %c0_i32_0 = arith.constant 0 : i32
    %c0_i32_1 = arith.constant 0 : i32
    return %c0_i32, %c0_i32_0 : i32, i32
  }
  func.func @transform_8(%arg0: i32) -> (i32, i32) {
    %c0_i32 = arith.constant 0 : i32
    %c0_i32_0 = arith.constant 0 : i32
    return %arg0, %c0_i32 : i32, i32
  }
}

</mosaic_0001>

<bundles_post_ra>
// kernel: cnn_forward.1
= control target key start
LH: loop header
LB: loop body
LE: loop exit
PB: predicated region body
PF: predicated region fallthrough
CT: control target
= control target key end

     0   :  { %13 = vsyncpa [#allocation4], 0  ;;  %s1859_s0 = inlined_call_operand.vmem [shape: f32[8,42], index: 0, kind: input, shape index: {}]   ;;  %s1860_s1 = inlined_call_operand.hbm [shape: bf16[128,512], index: 1, kind: input, shape index: {}]   ;;  %s1861_s2 = inlined_call_operand.hbm [shape: bf16[512,256], index: 2, kind: input, shape index: {}]   ;;  %s1862_s3 = inlined_call_operand.hbm [shape: bf16[256,128], index: 3, kind: input, shape index: {}]   ;;  %s1863_s4 = inlined_call_operand.vmem [shape: bf16[128,128], index: 4, kind: input, shape index: {}]   ;;  %s1864_s5 = inlined_call_operand.hbm [shape: bf16[128,128], index: 5, kind: input, shape index: {}]   ;;  %s1865_s6 = inlined_call_operand.vmem [shape: f32[1,128], index: 6, kind: input, shape index: {}]   ;;  %s1866_s7 = inlined_call_operand.vmem [shape: f32[1,128], index: 7, kind: input, shape index: {}]   ;;  %s1867_s8 = inlined_call_operand.vmem [shape: f32[8,128], index: 8, kind: output, shape index: {}]  }
   0x1   :  { %14 = vsyncpa [#allocation6], 0 }
   0x2   :  { %15 = vsyncpa [#allocation9], 0  ;;  %s1734_s27 = smov [#allocation5]  }
   0x3   :  { %s35_s28 = sshll.u32 %s1734_s27, 4  ;;  %s36_s28 = int_to_ptr.vmem [resolvable:$true] %s35_s28 }
   0x4   :  { %s1656_s29 = scalar_lea.vmem %s36_s28, 8192  ;;  %p1661_p1 = scmp.lt.s32.totalorder %s36_s28, %s36_s28 }
   0x5   :  { %p1657_p0 = scmp.ne.s32.totalorder %s36_s28, %s1656_s29  ;;  %p1662_p2 = scmp.lt.s32.totalorder %s1656_s29, %s1656_s29 }
   0x7   :  { %p1663_p3 = por %p1662_p2, %p1661_p1 }
   0x9   :  { %p1664_p4 = pnand %p1663_p3, %p1657_p0 }
   0xb   :  { %1667 = shalt.err (!%p1664_p4)
}
   0xc   :  { %s1735_s30 = smov 128   ;;  %s1736_s9 = smov 8  }
   0xd   :  { %41 = dma.hbm_to_vmem [thread:$0]  %s1861_s2, 8192, %s36_s28, [#allocation6], %s1735_s30, %s1735_s30, %s1736_s9  }
   0xe   :  { %s1737_s12 = smov [#allocation3]  }
   0xf   :  { %s23_s13 = sshll.u32 %s1737_s12, 4  ;;  %s24_s13 = int_to_ptr.vmem [resolvable:$true] %s23_s13 }
  0x10   :  { %s1676_s14 = scalar_lea.vmem %s24_s13, 4096  ;;  %p1681_p6 = scmp.lt.s32.totalorder %s24_s13, %s24_s13 }
  0x11   :  { %p1677_p5 = scmp.ne.s32.totalorder %s24_s13, %s1676_s14  ;;  %p1682_p7 = scmp.lt.s32.totalorder %s1676_s14, %s1676_s14 }
  0x13   :  { %p1683_p8 = por %p1682_p7, %p1681_p6 }
  0x15   :  { %p1684_p9 = pnand %p1683_p8, %p1677_p5 }
  0x17   :  { %1687 = shalt.err (!%p1684_p9)
}
  0x18   :  { %s1738_s15 = smov 256   ;;  %s1739_s16 = smov 16  }
  0x19   :  { %29 = dma.hbm_to_vmem [thread:$0]  %s1860_s1, 4096, %s24_s13, [#allocation4], %s1738_s15, %s1738_s15, %s1739_s16  }
  0x1a   :  { %s1740_s19 = smov [#allocation7]  }
  0x1b   :  { %s47_s20 = sshll.u32 %s1740_s19, 4  ;;  %s48_s20 = int_to_ptr.vmem [resolvable:$true] %s47_s20 }
  0x1c   :  { %s1696_s2 = scalar_lea.vmem %s48_s20, 2048  ;;  %p1701_p11 = scmp.lt.s32.totalorder %s48_s20, %s48_s20 }
  0x1d   :  { %p1697_p10 = scmp.ne.s32.totalorder %s48_s20, %s1696_s2  ;;  %p1702_p12 = scmp.lt.s32.totalorder %s1696_s2, %s1696_s2 }
  0x1f   :  { %p1703_p13 = por %p1702_p12, %p1701_p11 }
  0x21   :  { %p1704_p0 = pnand %p1703_p13, %p1697_p10 }
  0x23   :  { %1707 = shalt.err (!%p1704_p0)
}
  0x24   :  { %s1741_s21 = smov 64   ;;  %s1742_s22 = smov 4  }
  0x25   :  { %53 = dma.hbm_to_vmem [thread:$0]  %s1862_s3, 2048, %s48_s20, [#allocation6], %s1741_s21, %s1741_s21, %s1742_s22  }
  0x26   :  { %s1743_s25 = smov [#allocation8]  }
  0x27   :  { %s61_s26 = sshll.u32 %s1743_s25, 4  ;;  %s62_s26 = int_to_ptr.vmem [resolvable:$true] %s61_s26 }
  0x28   :  { %s1716_s1 = scalar_lea.vmem %s62_s26, 1024  ;;  %p1721_p2 = scmp.lt.s32.totalorder %s62_s26, %s62_s26 }
  0x29   :  { %p1717_p1 = scmp.ne.s32.totalorder %s62_s26, %s1716_s1  ;;  %p1722_p3 = scmp.lt.s32.totalorder %s1716_s1, %s1716_s1 }
  0x2b   :  { %p1723_p4 = por %p1722_p3, %p1721_p2 }
  0x2d   :  { %p1724_p5 = pnand %p1723_p4, %p1717_p1 }
  0x2f   :  { %1727 = shalt.err (!%p1724_p5)
}
  0x30   :  { %67 = dma.hbm_to_vmem [thread:$0]  %s1864_s5, 1024, %s62_s26, [#allocation9], %s1741_s21, %s1741_s21, %s1742_s22  }
  0x31   :  { %1728 = dma.done.wait [#allocation4], 4096  }
  0x32   :  { %1729 = vsyncadd [#allocation4], 4294963200 }
  0x33   :  { %1730 = dma.done.wait [#allocation6], 10240  }
  0x34   :  { %1731 = vsyncadd [#allocation6], 4294957056 }
  0x35   :  { %1732 = dma.done.wait [#allocation9], 1024  }
  0x36   :  { %1733 = vsyncadd [#allocation9], 4294966272  ;;  %v85_v0 = vlaneseq  ;;  %v1744_v1 = vmov 0   ;;  %v1745_v3 = vmov 0.0   ;;  %v1472_v5 = vld [vmem:[#allocation3 + $0xe4] ss:$16 sps:$4 sm:$0xff]  }
  0x37   :  { %319 = vmatprep.mubr.bf16.mxu0 %v1744_v1  ;;  %360 = vmatprep.mubr.bf16.mxu1 %v1744_v1  ;;  %v1474_v6 = vld [vmem:[#allocation3 + $0xec] ss:$16 sps:$4 sm:$0xff]   ;;  %v1476_v7 = vld [vmem:[#allocation3 + $0xe0] ss:$16 sps:$4 sm:$0xff]   ;;  %v1477_v8 = vld [vmem:[#allocation3 + $0xe8] ss:$16 sps:$4 sm:$0xff]  }
  0x38   :  { %v86_v2 = vand.u32 127, %v85_v0  ;;  %287 = vmatprep.subr.bf16.mxu0 %v1472_v5  ;;  %328 = vmatprep.subr.bf16.mxu1 %v1474_v6  ;;  %v1478_v9 = vld [vmem:[#allocation3 + $0xc4] ss:$16 sps:$4 sm:$0xff]   ;;  %v1480_v10 = vld [vmem:[#allocation3 + $0xcc] ss:$16 sps:$4 sm:$0xff]   ;;  %vm91_vm1 = vcmask 343040  }
  0x39   :  { %288 = vmatpush1.bf16.msra.mxu0 %v1476_v7  ;;  %329 = vmatpush1.bf16.msra.mxu1 %v1477_v8  ;;  %v1482_v11 = vld [vmem:[#allocation3 + $0xc0] ss:$16 sps:$4 sm:$0xff]   ;;  %v1483_v12 = vld [vmem:[#allocation3 + $0xc8] ss:$16 sps:$4 sm:$0xff]   ;;  %v1484_v13 = vld [vmem:[#allocation3 + $0xa4] ss:$16 sps:$4 sm:$0xff]  }
  0x3a   :  { %vm87_vm0 = vcmp.eq.s32.totalorder %v86_v2, 42  ;;  %289 = vmatprep.subr.bf16.mxu0 %v1478_v9  ;;  %330 = vmatprep.subr.bf16.mxu1 %v1480_v10  ;;  %v1486_v14 = vld [vmem:[#allocation3 + $0xac] ss:$16 sps:$4 sm:$0xff]   ;;  %v1488_v15 = vld [vmem:[#allocation3 + $0xa0] ss:$16 sps:$4 sm:$0xff]   ;;  %vm1746_vm2 = vmmov 0  }
  0x3b   :  { %v88_v4 = vsel %vm87_vm0, 1.0, %v1745_v3  ;;  %v1489_v16 = vld [vmem:[#allocation3 + $0xa8] ss:$16 sps:$4 sm:$0xff]   ;;  %v1490_v17 = vld [vmem:[#allocation3 + $0x84] ss:$16 sps:$4 sm:$0xff]  }
  0x3c   :  { %89 = vst [vmem:[#allocation2] sm:$0xff] %v88_v4  ;;  %v1492_v18 = vld [vmem:[#allocation3 + $0x8c] ss:$16 sps:$4 sm:$0xff]   ;;  %v1494_v19 = vld [vmem:[#allocation3 + $0x80] ss:$16 sps:$4 sm:$0xff]  }
  0x3d   :  { %290 = vmatpush1.bf16.msra.mxu0 %v1482_v11  ;;  %331 = vmatpush1.bf16.msra.mxu1 %v1483_v12  ;;  %v1495_v20 = vld [vmem:[#allocation3 + $0x88] ss:$16 sps:$4 sm:$0xff]   ;;  %v1496_v21 = vld [vmem:[#allocation3 + $0x64] ss:$16 sps:$4 sm:$0xff]   ;;  %v1498_v22 = vld [vmem:[#allocation3 + $0x6c] ss:$16 sps:$4 sm:$0xff]  }
  0x3e   :  { %291 = vmatprep.subr.bf16.mxu0 %v1484_v13  ;;  %332 = vmatprep.subr.bf16.mxu1 %v1486_v14  ;;  %v1500_v23 = vld [vmem:[#allocation3 + $0x60] ss:$16 sps:$4 sm:$0xff]   ;;  %v1501_v24 = vld [vmem:[#allocation3 + $0x68] ss:$16 sps:$4 sm:$0xff]   ;;  %v1502_v25 = vld [vmem:[#allocation3 + $0x44] ss:$16 sps:$4 sm:$0xff]  }
  0x3f   :  { %v1504_v26 = vld [vmem:[#allocation3 + $0x4c] ss:$16 sps:$4 sm:$0xff]   ;;  %v1506_v27 = vld [vmem:[#allocation3 + $0x40] ss:$16 sps:$4 sm:$0xff]   ;;  %v1507_v28 = vld [vmem:[#allocation3 + $0x48] ss:$16 sps:$4 sm:$0xff]  }
  0x40   :  { %v1508_v29 = vld [vmem:[#allocation3 + $0x24] ss:$16 sps:$4 sm:$0xff]   ;;  %v1510_v30 = vld [vmem:[#allocation3 + $0x2c] ss:$16 sps:$4 sm:$0xff]   ;;  %v1512_v32 = vld [vmem:[#allocation3 + $0x20] ss:$16 sps:$4 sm:$0xff]  }
  0x41   :  { %292 = vmatpush1.bf16.msra.mxu0 %v1488_v15  ;;  %333 = vmatpush1.bf16.msra.mxu1 %v1489_v16  ;;  %v90_v31 = vld [vmem:[%s1859_s0] sm:$0xff]  ;;  %v1514_v34 = vld [vmem:[#allocation3 + $0x4] ss:$16 sps:$4 sm:$0xff]   ;;  %v1518_v36 = vld [vmem:[#allocation3] ss:$16 sps:$4 sm:$0xff]  }
  0x42   :  { %293 = vmatprep.subr.bf16.mxu0 %v1490_v17  ;;  %334 = vmatprep.subr.bf16.mxu1 %v1492_v18  ;;  %92 = vst.msk [vmem:[#allocation2] sm:$0xff] %vm91_vm1, %v90_v31  ;;  %v1513_v33 = vld [vmem:[#allocation3 + $0x28] ss:$16 sps:$4 sm:$0xff]   ;;  %v1516_v35 = vld [vmem:[#allocation3 + $0xc] ss:$16 sps:$4 sm:$0xff]  }
  0x43   :  { %v1519_v37 = vld [vmem:[#allocation3 + $0x8] ss:$16 sps:$4 sm:$0xff]   ;;  %v1522_v39 = vld [vmem:[#allocation5 + $0x74] ss:$8 sps:$4 sm:$0xff]   ;;  %v1528_v44 = vld [vmem:[#allocation5 + $0x64] ss:$8 sps:$4 sm:$0xff]  }
  0x44   :  { %v1525_v40 = vld [vmem:[#allocation5 + $0x174] ss:$8 sps:$4 sm:$0xff]   ;;  %v1520_v42 = vld [vmem:[#allocation5 + $0x70] ss:$8 sps:$4 sm:$0xff]   ;;  %v1531_v45 = vld [vmem:[#allocation5 + $0x164] ss:$8 sps:$4 sm:$0xff]  }
  0x45   :  { %294 = vmatpush1.bf16.msra.mxu0 %v1494_v19  ;;  %335 = vmatpush1.bf16.msra.mxu1 %v1495_v20  ;;  %v1523_v43 = vld [vmem:[#allocation5 + $0x170] ss:$8 sps:$4 sm:$0xff]   ;;  %v1526_v46 = vld [vmem:[#allocation5 + $0x60] ss:$8 sps:$4 sm:$0xff]   ;;  %v1534_v48 = vld [vmem:[#allocation5 + $0x54] ss:$8 sps:$4 sm:$0xff]  }
  0x46   :  { %295 = vmatprep.subr.bf16.mxu0 %v1496_v21  ;;  %336 = vmatprep.subr.bf16.mxu1 %v1498_v22  ;;  %v1529_v47 = vld [vmem:[#allocation5 + $0x160] ss:$8 sps:$4 sm:$0xff]   ;;  %v1537_v49 = vld [vmem:[#allocation5 + $0x154] ss:$8 sps:$4 sm:$0xff]   ;;  %v1532_v50 = vld [vmem:[#allocation5 + $0x50] ss:$8 sps:$4 sm:$0xff]  }
  0x47   :  { %v1535_v51 = vld [vmem:[#allocation5 + $0x150] ss:$8 sps:$4 sm:$0xff]   ;;  %v1540_v52 = vld [vmem:[#allocation5 + $0x44] ss:$8 sps:$4 sm:$0xff]   ;;  %v1538_v54 = vld [vmem:[#allocation5 + $0x40] ss:$8 sps:$4 sm:$0xff]  }
  0x48   :  { %v1543_v53 = vld [vmem:[#allocation5 + $0x144] ss:$8 sps:$4 sm:$0xff]   ;;  %v1541_v55 = vld [vmem:[#allocation5 + $0x140] ss:$8 sps:$4 sm:$0xff]   ;;  %v1546_v56 = vld [vmem:[#allocation5 + $0x34] ss:$8 sps:$4 sm:$0xff]  }
  0x49   :  { %296 = vmatpush1.bf16.msra.mxu0 %v1500_v23  ;;  %337 = vmatpush1.bf16.msra.mxu1 %v1501_v24  ;;  %v93_v38 = vld [vmem:[#allocation2] sm:$0xff]  ;;  %v1552_v60 = vld [vmem:[#allocation5 + $0x24] ss:$8 sps:$4 sm:$0xff]   ;;  %v1550_v62 = vld [vmem:[#allocation5 + $0x20] ss:$8 sps:$4 sm:$0xff]  }
  0x4a   :  { %297 = vmatprep.subr.bf16.mxu0 %v1502_v25  ;;  %338 = vmatprep.subr.bf16.mxu1 %v1504_v26  ;;  %v94_v41 = vpack.c.bf16 %v93_v38, %v93_v38  ;;  %v1549_v57 = vld [vmem:[#allocation5 + $0x134] ss:$8 sps:$4 sm:$0xff]   ;;  %v1544_v58 = vld [vmem:[#allocation5 + $0x30] ss:$8 sps:$4 sm:$0xff]   ;;  %v1555_v61 = vld [vmem:[#allocation5 + $0x124] ss:$8 sps:$4 sm:$0xff]  }
  0x4b   :  { %v1547_v59 = vld [vmem:[#allocation5 + $0x130] ss:$8 sps:$4 sm:$0xff]   ;;  %v1553_v63 = vld [vmem:[#allocation5 + $0x120] ss:$8 sps:$4 sm:$0xff]   ;;  %v1558_v0 = vld [vmem:[#allocation5 + $0x14] ss:$8 sps:$4 sm:$0xff]  }
  0x4c   :  { %v1561_v1 = vld [vmem:[#allocation5 + $0x114] ss:$8 sps:$4 sm:$0xff]   ;;  %v1556_v2 = vld [vmem:[#allocation5 + $0x10] ss:$8 sps:$4 sm:$0xff]   ;;  %v1564_v5 = vld [vmem:[#allocation5 + $0x4] ss:$8 sps:$4 sm:$0xff]  }
  0x4d   :  { %298 = vmatpush1.bf16.msra.mxu0 %v1506_v27  ;;  %339 = vmatpush1.bf16.msra.mxu1 %v1507_v28  ;;  %v1559_v4 = vld [vmem:[#allocation5 + $0x110] ss:$8 sps:$4 sm:$0xff]   ;;  %v1567_v6 = vld [vmem:[#allocation5 + $0x104] ss:$8 sps:$4 sm:$0xff]   ;;  %v1562_v7 = vld [vmem:[#allocation5] ss:$8 sps:$4 sm:$0xff]  }
  0x4e   :  { %299 = vmatprep.subr.bf16.mxu0 %v1508_v29  ;;  %340 = vmatprep.subr.bf16.mxu1 %v1510_v30  ;;  %v1565_v8 = vld [vmem:[#allocation5 + $0x100] ss:$8 sps:$4 sm:$0xff]   ;;  %v1570_v9 = vld [vmem:[#allocation5 + $0xf4] ss:$8 sps:$4 sm:$0xff]   ;;  %v1568_v11 = vld [vmem:[#allocation5 + $0xf0] ss:$8 sps:$4 sm:$0xff]  }
  0x4f   :  { %v1573_v10 = vld [vmem:[#allocation5 + $0x1f4] ss:$8 sps:$4 sm:$0xff]   ;;  %v1571_v12 = vld [vmem:[#allocation5 + $0x1f0] ss:$8 sps:$4 sm:$0xff]   ;;  %v1576_v13 = vld [vmem:[#allocation5 + $0xe4] ss:$8 sps:$4 sm:$0xff]  }
  0x50   :  { %v1579_v14 = vld [vmem:[#allocation5 + $0x1e4] ss:$8 sps:$4 sm:$0xff]   ;;  %v1574_v15 = vld [vmem:[#allocation5 + $0xe0] ss:$8 sps:$4 sm:$0xff]   ;;  %v1582_v17 = vld [vmem:[#allocation5 + $0xd4] ss:$8 sps:$4 sm:$0xff]  }
  0x51   :  { %300 = vmatpush1.bf16.msra.mxu0 %v1512_v32  ;;  %341 = vmatpush1.bf16.msra.mxu1 %v1513_v33  ;;  %v1577_v16 = vld [vmem:[#allocation5 + $0x1e0] ss:$8 sps:$4 sm:$0xff]   ;;  %v1585_v18 = vld [vmem:[#allocation5 + $0x1d4] ss:$8 sps:$4 sm:$0xff]   ;;  %v1580_v19 = vld [vmem:[#allocation5 + $0xd0] ss:$8 sps:$4 sm:$0xff]  }
  0x52   :  { %301 = vmatprep.subr.bf16.mxu0 %v1514_v34  ;;  %342 = vmatprep.subr.bf16.mxu1 %v1516_v35  ;;  %v1583_v20 = vld [vmem:[#allocation5 + $0x1d0] ss:$8 sps:$4 sm:$0xff]   ;;  %v1588_v21 = vld [vmem:[#allocation5 + $0xc4] ss:$8 sps:$4 sm:$0xff]   ;;  %v1586_v23 = vld [vmem:[#allocation5 + $0xc0] ss:$8 sps:$4 sm:$0xff]  }
  0x53   :  { %v1591_v22 = vld [vmem:[#allocation5 + $0x1c4] ss:$8 sps:$4 sm:$0xff]   ;;  %v1589_v24 = vld [vmem:[#allocation5 + $0x1c0] ss:$8 sps:$4 sm:$0xff]   ;;  %v1594_v25 = vld [vmem:[#allocation5 + $0xb4] ss:$8 sps:$4 sm:$0xff]  }
  0x54   :  { %v1597_v26 = vld [vmem:[#allocation5 + $0x1b4] ss:$8 sps:$4 sm:$0xff]   ;;  %v1592_v27 = vld [vmem:[#allocation5 + $0xb0] ss:$8 sps:$4 sm:$0xff]   ;;  %v1600_v29 = vld [vmem:[#allocation5 + $0xa4] ss:$8 sps:$4 sm:$0xff]  }
  0x55   :  { %302 = vmatpush1.bf16.msra.mxu0 %v1518_v36  ;;  %343 = vmatpush1.bf16.msra.mxu1 %v1519_v37  ;;  %v1595_v28 = vld [vmem:[#allocation5 + $0x1b0] ss:$8 sps:$4 sm:$0xff]   ;;  %v1603_v30 = vld [vmem:[#allocation5 + $0x1a4] ss:$8 sps:$4 sm:$0xff]   ;;  %v1598_v31 = vld [vmem:[#allocation5 + $0xa0] ss:$8 sps:$4 sm:$0xff]  }
  0x56   :  { %761 = vmatprep.subr.bf16.mxu0 %v1522_v39  ;;  %802 = vmatprep.subr.bf16.mxu1 %v1525_v40  ;;  %v1601_v32 = vld [vmem:[#allocation5 + $0x1a0] ss:$8 sps:$4 sm:$0xff]   ;;  %v1606_v33 = vld [vmem:[#allocation5 + $0x94] ss:$8 sps:$4 sm:$0xff]   ;;  %v1604_v35 = vld [vmem:[#allocation5 + $0x90] ss:$8 sps:$4 sm:$0xff]  }
  0x57   :  { %v1609_v34 = vld [vmem:[#allocation5 + $0x194] ss:$8 sps:$4 sm:$0xff]   ;;  %v1607_v36 = vld [vmem:[#allocation5 + $0x190] ss:$8 sps:$4 sm:$0xff]   ;;  %v1612_v37 = vld [vmem:[#allocation5 + $0x84] ss:$8 sps:$4 sm:$0xff]  }
  0x58   :  { %320 = vmatmul.mubr.bf16.vlgmr.msra.gmra.mxu0 %v94_v41  ;;  %361 = vmatmul.mubr.bf16.vlgmr.msra.gmra.mxu1 %v94_v41  ;;  %v1615_v38 = vld [vmem:[#allocation5 + $0x184] ss:$8 sps:$4 sm:$0xff]   ;;  %v1610_v39 = vld [vmem:[#allocation5 + $0x80] ss:$8 sps:$4 sm:$0xff]   ;;  %v1616_v41 = vld [vmem:[#allocation7 + $0x78] sm:$0xff]  }
  0x59   :  { %762 = vmatpush1.bf16.msra.mxu0 %v1520_v42  ;;  %803 = vmatpush1.bf16.msra.mxu1 %v1523_v43  ;;  %v1613_v40 = vld [vmem:[#allocation5 + $0x180] ss:$8 sps:$4 sm:$0xff]  }
  0x5a   :  { %763 = vmatprep.subr.bf16.mxu0 %v1528_v44  ;;  %804 = vmatprep.subr.bf16.mxu1 %v1531_v45 }
  0x5d   :  { %764 = vmatpush1.bf16.msra.mxu0 %v1526_v46  ;;  %805 = vmatpush1.bf16.msra.mxu1 %v1529_v47 }
  0x5e   :  { %765 = vmatprep.subr.bf16.mxu0 %v1534_v48  ;;  %806 = vmatprep.subr.bf16.mxu1 %v1537_v49 }
  0x61   :  { %766 = vmatpush1.bf16.msra.mxu0 %v1532_v50  ;;  %807 = vmatpush1.bf16.msra.mxu1 %v1535_v51 }
  0x62   :  { %767 = vmatprep.subr.bf16.mxu0 %v1540_v52  ;;  %808 = vmatprep.subr.bf16.mxu1 %v1543_v53 }
  0x65   :  { %768 = vmatpush1.bf16.msra.mxu0 %v1538_v54  ;;  %809 = vmatpush1.bf16.msra.mxu1 %v1541_v55  ;;  %v1617_v54 = vld [vmem:[#allocation7 + $0x38] sm:$0xff]  }
  0x66   :  { %769 = vmatprep.subr.bf16.mxu0 %v1546_v56  ;;  %810 = vmatprep.subr.bf16.mxu1 %v1549_v57 }
  0x69   :  { %770 = vmatpush1.bf16.msra.mxu0 %v1544_v58  ;;  %811 = vmatpush1.bf16.msra.mxu1 %v1547_v59  ;;  %v1618_v59 = vld [vmem:[#allocation7 + $0x70] sm:$0xff]  }
  0x6a   :  { %771 = vmatprep.subr.bf16.mxu0 %v1552_v60  ;;  %812 = vmatprep.subr.bf16.mxu1 %v1555_v61  ;;  %v1619_v60 = vld [vmem:[#allocation7 + $0x30] sm:$0xff]   ;;  %v1620_v61 = vld [vmem:[#allocation7 + $0x68] sm:$0xff]  }
  0x6d   :  { %772 = vmatpush1.bf16.msra.mxu0 %v1550_v62  ;;  %813 = vmatpush1.bf16.msra.mxu1 %v1553_v63  ;;  %v1621_v62 = vld [vmem:[#allocation7 + $0x28] sm:$0xff]   ;;  %v1622_v63 = vld [vmem:[#allocation7 + $0x60] sm:$0xff]  }
  0x6e   :  { %773 = vmatprep.subr.bf16.mxu0 %v1558_v0  ;;  %814 = vmatprep.subr.bf16.mxu1 %v1561_v1  ;;  %v1623_v0 = vld [vmem:[#allocation7 + $0x20] sm:$0xff]   ;;  %v1624_v1 = vld [vmem:[#allocation7 + $0x58] sm:$0xff]  }
  0x71   :  { %774 = vmatpush1.bf16.msra.mxu0 %v1556_v2  ;;  %815 = vmatpush1.bf16.msra.mxu1 %v1559_v4  ;;  %v1625_v2 = vld [vmem:[#allocation7 + $0x18] sm:$0xff]   ;;  %v1626_v4 = vld [vmem:[#allocation7 + $0x50] sm:$0xff]  }
  0x72   :  { %775 = vmatprep.subr.bf16.mxu0 %v1564_v5  ;;  %816 = vmatprep.subr.bf16.mxu1 %v1567_v6  ;;  %v1627_v5 = vld [vmem:[#allocation7 + $0x10] sm:$0xff]   ;;  %v1628_v6 = vld [vmem:[#allocation7 + $0x48] sm:$0xff]  }
  0x75   :  { %776 = vmatpush1.bf16.msra.mxu0 %v1562_v7  ;;  %817 = vmatpush1.bf16.msra.mxu1 %v1565_v8  ;;  %v1629_v7 = vld [vmem:[#allocation7 + $0x8] sm:$0xff]   ;;  %v1630_v8 = vld [vmem:[#allocation7 + $0x40] sm:$0xff]  }
  0x76   :  { %777 = vmatprep.subr.bf16.mxu0 %v1570_v9  ;;  %818 = vmatprep.subr.bf16.mxu1 %v1573_v10  ;;  %v1631_v9 = vld [vmem:[#allocation7] sm:$0xff]   ;;  %v1632_v10 = vld [vmem:[%s1863_s4 + $0x38] sm:$0xff]  }
  0x79   :  { %778 = vmatpush2.bf16.msra.mxu0 %v1568_v11  ;;  %819 = vmatpush2.bf16.msra.mxu1 %v1571_v12  ;;  %v1633_v11 = vld [vmem:[%s1863_s4 + $0x30] sm:$0xff]   ;;  %v1634_v12 = vld [vmem:[%s1863_s4 + $0x28] sm:$0xff]  }
  0x7a   :  { %779 = vmatprep.subr.bf16.mxu0 %v1576_v13  ;;  %820 = vmatprep.subr.bf16.mxu1 %v1579_v14  ;;  %v1635_v13 = vld [vmem:[%s1863_s4 + $0x20] sm:$0xff]   ;;  %v1636_v14 = vld [vmem:[%s1863_s4 + $0x18] sm:$0xff]  }
  0x7d   :  { %780 = vmatpush2.bf16.msra.mxu0 %v1574_v15  ;;  %821 = vmatpush2.bf16.msra.mxu1 %v1577_v16  ;;  %v1637_v15 = vld [vmem:[%s1863_s4 + $0x10] sm:$0xff]  }
  0x7e   :  { %781 = vmatprep.subr.bf16.mxu0 %v1582_v17  ;;  %822 = vmatprep.subr.bf16.mxu1 %v1585_v18 }
  0x81   :  { %782 = vmatpush2.bf16.msra.mxu0 %v1580_v19  ;;  %823 = vmatpush2.bf16.msra.mxu1 %v1583_v20 }
  0x82   :  { %783 = vmatprep.subr.bf16.mxu0 %v1588_v21  ;;  %824 = vmatprep.subr.bf16.mxu1 %v1591_v22 }
  0x85   :  { %784 = vmatpush2.bf16.msra.mxu0 %v1586_v23  ;;  %825 = vmatpush2.bf16.msra.mxu1 %v1589_v24 }
  0x86   :  { %785 = vmatprep.subr.bf16.mxu0 %v1594_v25  ;;  %826 = vmatprep.subr.bf16.mxu1 %v1597_v26 }
  0x89   :  { %786 = vmatpush2.bf16.msra.mxu0 %v1592_v27  ;;  %827 = vmatpush2.bf16.msra.mxu1 %v1595_v28 }
  0x8a   :  { %787 = vmatprep.subr.bf16.mxu0 %v1600_v29  ;;  %828 = vmatprep.subr.bf16.mxu1 %v1603_v30  ;;  %v1638_v30 = vld [vmem:[%s1863_s4 + $0x8] sm:$0xff]  }
  0x8d   :  { %788 = vmatpush2.bf16.msra.mxu0 %v1598_v31  ;;  %829 = vmatpush2.bf16.msra.mxu1 %v1601_v32  ;;  %v1639_v31 = vld [vmem:[%s1863_s4] sm:$0xff]  }
  0x8e   :  { %789 = vmatprep.subr.bf16.mxu0 %v1606_v33  ;;  %830 = vmatprep.subr.bf16.mxu1 %v1609_v34  ;;  %v1640_v32 = vld [vmem:[#allocation8 + $0x38] sm:$0xff]   ;;  %v1641_v33 = vld [vmem:[#allocation8 + $0x30] sm:$0xff]   ;;  %v1642_v34 = vld [vmem:[#allocation8 + $0x28] sm:$0xff]  }
  0x91   :  { %790 = vmatpush2.bf16.msra.mxu0 %v1604_v35  ;;  %831 = vmatpush2.bf16.msra.mxu1 %v1607_v36  ;;  %v1643_v35 = vld [vmem:[#allocation8 + $0x20] sm:$0xff]   ;;  %v1644_v36 = vld [vmem:[#allocation8 + $0x18] sm:$0xff]  }
  0x92   :  { %791 = vmatprep.subr.bf16.mxu0 %v1612_v37  ;;  %832 = vmatprep.subr.bf16.mxu1 %v1615_v38  ;;  %v1645_v37 = vld [vmem:[#allocation8 + $0x10] sm:$0xff]  }
  0x95   :  { %792 = vmatpush2.bf16.msra.mxu0 %v1610_v39  ;;  %833 = vmatpush2.bf16.msra.mxu1 %v1613_v40 }
  0x96   :  { %1419 = vmatprep.subr.bf16.mxu1 %v1745_v3  ;;  %1379 = vmatprep.subr.bf16.mxu0 %v1616_v41 }
 0x118   :  { %v321_v42 = vpop.f32.mrf.mxu0  ;;  %v362_v43 = vpop.f32.mrf.mxu1 }
 0x119   :  { %v369_v44 = vmax.f32 %v321_v42, 0.0  ;;  %v371_v45 = vmax.f32 %v362_v43, 0.0 }
 0x11a   :  { %v323_v46 = vpop.f32.mrf.mxu0  ;;  %v364_v47 = vpop.f32.mrf.mxu1 }
 0x11b   :  { %v370_v48 = vmax.f32 %v323_v46, 0.0  ;;  %v372_v49 = vmax.f32 %v364_v47, 0.0  ;;  %v373_v55 = vpack.c.bf16 %v369_v44, %v369_v44  ;;  %v375_v56 = vpack.c.bf16 %v371_v45, %v371_v45  ;;  %v1646_v45 = vld [vmem:[#allocation8 + $0x8] sm:$0xff]   ;;  %v1647_v46 = vld [vmem:[#allocation8] sm:$0xff]   ;;  %v1361_v47 = vld [vmem:[%s1865_s6] ss:$0 sm:$0xff] }
 0x11c   :  { %v325_v50 = vpop.f32.mrf.mxu0  ;;  %v366_v51 = vpop.f32.mrf.mxu1 }
 0x11d   :  { %v374_v52 = vpack.c.bf16 %v370_v48, %v370_v48  ;;  %v376_v53 = vpack.c.bf16 %v372_v49, %v372_v49 }
 0x11e   :  { %v326_v57 = vpop.f32.mrf.mxu0  ;;  %v367_v58 = vpop.f32.mrf.mxu1 }
 0x11f   :  { %793 = vmatprep.mubr.bf16.mxu0 %v374_v52  ;;  %834 = vmatprep.mubr.bf16.mxu1 %v376_v53 }
 0x120   :  { %794 = vmatmul.mubr.bf16.vlgmr.msra.gmra.mxu0 %v373_v55  ;;  %835 = vmatmul.mubr.bf16.vlgmr.msra.gmra.mxu1 %v375_v56  ;;  %v1370_v55 = vld [vmem:[%s1866_s7] ss:$0 sm:$0xff] }
 0x121   :  { %1380 = vmatpush3.bf16.msra.mxu0 %v1617_v54  ;;  %1420 = vmatpush3.bf16.msra.mxu1 %v1632_v10 }
 0x122   :  { %1381 = vmatprep.subr.bf16.mxu0 %v1618_v59  ;;  %1421 = vmatprep.subr.bf16.mxu1 %v1745_v3 }
 0x123   :  { %1435 = vmatprep.mubr.msk.bf16.mxu1 %vm1746_vm2, %v1745_v3 }
 0x125   :  { %1382 = vmatpush3.bf16.msra.mxu0 %v1619_v60  ;;  %1422 = vmatpush3.bf16.msra.mxu1 %v1633_v11 }
 0x126   :  { %1383 = vmatprep.subr.bf16.mxu0 %v1620_v61  ;;  %1423 = vmatprep.subr.bf16.mxu1 %v1745_v3 }
 0x129   :  { %1384 = vmatpush3.bf16.msra.mxu0 %v1621_v62  ;;  %1424 = vmatpush3.bf16.msra.mxu1 %v1634_v12 }
 0x12a   :  { %1385 = vmatprep.subr.bf16.mxu0 %v1622_v63  ;;  %1425 = vmatprep.subr.bf16.mxu1 %v1745_v3 }
 0x12d   :  { %1386 = vmatpush3.bf16.msra.mxu0 %v1623_v0  ;;  %1426 = vmatpush3.bf16.msra.mxu1 %v1635_v13 }
 0x12e   :  { %1387 = vmatprep.subr.bf16.mxu0 %v1624_v1  ;;  %1427 = vmatprep.subr.bf16.mxu1 %v1745_v3 }
 0x131   :  { %1388 = vmatpush3.bf16.msra.mxu0 %v1625_v2  ;;  %1428 = vmatpush3.bf16.msra.mxu1 %v1636_v14 }
 0x132   :  { %1389 = vmatprep.subr.bf16.mxu0 %v1626_v4  ;;  %1429 = vmatprep.subr.bf16.mxu1 %v1745_v3 }
 0x135   :  { %1390 = vmatpush3.bf16.msra.mxu0 %v1627_v5  ;;  %1430 = vmatpush3.bf16.msra.mxu1 %v1637_v15 }
 0x136   :  { %1391 = vmatprep.subr.bf16.mxu0 %v1628_v6  ;;  %1431 = vmatprep.subr.bf16.mxu1 %v1745_v3 }
 0x139   :  { %1392 = vmatpush3.bf16.msra.mxu0 %v1629_v7  ;;  %1432 = vmatpush3.bf16.msra.mxu1 %v1638_v30 }
 0x13a   :  { %1393 = vmatprep.subr.bf16.mxu0 %v1630_v8  ;;  %1433 = vmatprep.subr.bf16.mxu1 %v1745_v3 }
 0x13d   :  { %1394 = vmatpush3.bf16.msra.mxu0 %v1631_v9  ;;  %1434 = vmatpush3.bf16.msra.mxu1 %v1639_v31 }
 0x13e   :  { %1439 = vmatprep.subr.bf16.mxu0 %v1745_v3 }
 0x1e0   :  { %v795_v16 = vpop.f32.mrf.mxu0  ;;  %v836_v17 = vpop.f32.mrf.mxu1 }
 0x1e1   :  { %v837_v18 = vadd.f32 %v836_v17, %v795_v16 }
 0x1e2   :  { %v797_v19 = vpop.f32.mrf.mxu0  ;;  %v838_v20 = vpop.f32.mrf.mxu1 }
 0x1e3   :  { %v839_v21 = vadd.f32 %v838_v20, %v797_v19  ;;  %v843_v22 = vmax.f32 %v837_v18, 0.0 }
 0x1e4   :  { %v799_v23 = vpop.f32.mrf.mxu0  ;;  %v840_v24 = vpop.f32.mrf.mxu1 }
 0x1e5   :  { %v844_v25 = vmax.f32 %v839_v21, 0.0  ;;  %v845_v29 = vpack.c.bf16 %v843_v22, %v843_v22 }
 0x1e6   :  { %v800_v26 = vpop.f32.mrf.mxu0  ;;  %v841_v27 = vpop.f32.mrf.mxu1 }
 0x1e7   :  { %v846_v28 = vpack.c.bf16 %v844_v25, %v844_v25 }
 0x1e9   :  { %1007 = vmatprep.mubr.bf16.mxu0 %v846_v28 }
 0x1ea   :  { %1008 = vmatmul.mubr.bf16.vlgmr.msra.gmra.mxu0 %v845_v29 }
 0x1eb   :  { %1455 = vmatprep.mubr.msk.bf16.mxu0 %vm1746_vm2, %v1745_v3  ;;  %1440 = vmatpush3.bf16.msra.mxu0 %v1640_v32 }
 0x1ec   :  { %1441 = vmatprep.subr.bf16.mxu0 %v1745_v3 }
 0x1ef   :  { %1442 = vmatpush3.bf16.msra.mxu0 %v1641_v33 }
 0x1f0   :  { %1443 = vmatprep.subr.bf16.mxu0 %v1745_v3 }
 0x1f3   :  { %1444 = vmatpush3.bf16.msra.mxu0 %v1642_v34 }
 0x1f4   :  { %1445 = vmatprep.subr.bf16.mxu0 %v1745_v3 }
 0x1f7   :  { %1446 = vmatpush3.bf16.msra.mxu0 %v1643_v35 }
 0x1f8   :  { %1447 = vmatprep.subr.bf16.mxu0 %v1745_v3 }
 0x1fb   :  { %1448 = vmatpush3.bf16.msra.mxu0 %v1644_v36 }
 0x1fc   :  { %1449 = vmatprep.subr.bf16.mxu0 %v1745_v3 }
 0x1ff   :  { %1450 = vmatpush3.bf16.msra.mxu0 %v1645_v37 }
 0x200   :  { %1451 = vmatprep.subr.bf16.mxu0 %v1745_v3 }
 0x203   :  { %1452 = vmatpush3.bf16.msra.mxu0 %v1646_v45 }
 0x204   :  { %1453 = vmatprep.subr.bf16.mxu0 %v1745_v3 }
 0x207   :  { %1454 = vmatpush3.bf16.msra.mxu0 %v1647_v46 }
 0x2aa   :  { %v1395_v38 = vpop.f32.mrf.mxu0 }
 0x2ac   :  { %v1396_v39 = vpop.f32.mrf.mxu0 }
 0x2ad   :  { %v1397_v40 = vadd.f32 %v1396_v39, %v1395_v38 }
 0x2ae   :  { %v1398_v41 = vpop.f32.mrf.mxu0 }
 0x2af   :  { %v1015_v42 = vmax.f32 %v1397_v40, 0.0 }
 0x2b0   :  { %v1399_v43 = vpop.f32.mrf.mxu0 }
 0x2b1   :  { %v1016_v44 = vpack.c.bf16 %v1015_v42, %v1015_v42 }
 0x2b3   :  { %1436 = vmatmul.mubr.bf16.vlgmr.msra.gmra.mxu1 %v1016_v44 }
 0x373   :  { %v1122_v48 = vpop.f32.mrf.mxu1 }
 0x374   :  { %v1123_v49 = vadd.f32 %v1361_v47, %v1122_v48 }
 0x375   :  { %v1437_v50 = vpop.f32.mrf.mxu1 }
 0x376   :  { %v1128_v51 = vmax.f32 %v1123_v49, 0.0 }
 0x377   :  { %v1125_v52 = vpop.f32.mrf.mxu1 }
 0x378   :  { %v1129_v53 = vpack.c.bf16 %v1128_v51, %v1128_v51 }
 0x379   :  { %v1438_v54 = vpop.f32.mrf.mxu1 }
 0x37a   :  { %1456 = vmatmul.mubr.bf16.vlgmr.msra.gmra.mxu0 %v1129_v53 }
 0x43a   :  { %v1235_v56 = vpop.f32.mrf.mxu0 }
 0x43b   :  { %v1236_v3 = vadd.f32 %v1370_v55, %v1235_v56 }
 0x43c   :  { %v1457_v57 = vpop.f32.mrf.mxu0 }
 0x43d   :  { %1241 = vst [vmem:[%s1867_s8] sm:$0xff] %v1236_v3 }
 0x43e   :  { %v1238_v58 = vpop.f32.mrf.mxu0 }
 0x440   :  { %v1458_v59 = vpop.f32.mrf.mxu0 }
 0x441   :  { %1246 = vsyncpa [#allocation4], 1 }
 0x442   :  { %1247 = vsyncpa [#allocation6], 1 }
 0x443   :  { %1248 = vsyncpa [#allocation9], 1 }

</bundles_post_ra>
